<compile_context>
chip_gen: v7x
topology: tpu7x:2x2x1
jax: 0.10.0
libtpu: 0.0.40
codegen_flags: <defaults>
</compile_context>

<pallas_src>
import functools
import math

import numpy as np

import jax
import jax.numpy as jnp
from jax.experimental import pallas as pl
from jax.experimental.pallas import tpu as pltpu


def _posenc_flat_kernel(tx_ref, ty_ref, rx_ref, ry_ref, o_ref):
    """out[c, l] = TX[c, l // Y] + TY[c, l % Y], built lane-dense with two MXU
    matmuls against constant 0/1 selection matrices (exact under HIGHEST: each
    output element is one 1.0*value product plus exact zeros)."""
    ex = jnp.dot(tx_ref[...], rx_ref[...],
                 precision=jax.lax.Precision.HIGHEST,
                 preferred_element_type=jnp.float32)
    ey = jnp.dot(ty_ref[...], ry_ref[...],
                 precision=jax.lax.Precision.HIGHEST,
                 preferred_element_type=jnp.float32)
    o_ref[...] = (ex + ey).astype(o_ref.dtype)


@functools.lru_cache(maxsize=32)
def _build_tables(C, X, Y):
    """Host-side deterministic tables (shape-only, like the registered buffer).

    Returns:
      tx: (Cp, X) f32 -- per-channel x-rows (zeros for y-channels / padding)
      ty: (Cp, Y) f32 -- per-channel y-rows (zeros for x-channels / padding)
      rx: (X, X*Y) f32 0/1 -- "repeat each x value Y times" along the flat axis
      ry: (Y, X*Y) f32 0/1 -- "tile the y pattern X times" along the flat axis
    where Cp = C rounded up to a multiple of 8 (sublane-legal channel blocks).
    """
    half = int(math.ceil(C / 2))          # PositionalEncoding2D.channels
    nfreq = len(range(0, half, 2))        # len(inv_freq)
    if 2 * nfreq != half:
        # Faithful to the torch module: emb[:, :, :channels] = emb_x shape-mismatches
        # (and raises) whenever ceil(C/2) is odd, so we reject the same cases.
        raise ValueError("channels must be such that ceil(channels/2) is even")

    inv_freq = 1.0 / (10000.0 ** (np.arange(0, half, 2, dtype=np.float32)
                                  / np.float32(half)))
    sx = np.arange(X, dtype=np.float32)[:, None] * inv_freq[None, :]   # (X, nfreq)
    sy = np.arange(Y, dtype=np.float32)[:, None] * inv_freq[None, :]   # (Y, nfreq)
    emb_x = np.concatenate([np.sin(sx), np.cos(sx)], axis=-1)          # (X, half)
    emb_y = np.concatenate([np.sin(sy), np.cos(sy)], axis=-1)          # (Y, half)

    Cp = ((C + 7) // 8) * 8
    tx = np.zeros((Cp, X), dtype=np.float32)
    tx[:half, :] = emb_x.T                        # channels 0..half-1 vary with x
    ty = np.zeros((Cp, Y), dtype=np.float32)
    ty[half:C, :] = emb_y.T[: C - half, :]        # channels half..C-1 vary with y

    XY = X * Y
    lanes = np.arange(XY)
    rx = (lanes[None, :] // Y == np.arange(X)[:, None]).astype(np.float32)  # (X, XY)
    ry = (lanes[None, :] % Y == np.arange(Y)[:, None]).astype(np.float32)   # (Y, XY)
    return tx, ty, rx, ry


def _pick_tiles(Cp, X, Y, XY):
    """Pick (channel_tile tc, flat-spatial tile L).

    L: full X*Y when small, else a multiple of 128 sized so the double-buffered
       RX/RY column blocks stay ~<=2 MiB each (lane-dense either way).
    tc: multiple of 8 (sublane rule; blocks may be partial -> masked), targeting
        multi-MiB f32 output blocks and >=2 total grid steps when possible so
        v7x's second TensorCore has work to split.
    """
    L = (2 << 20) // max((X + Y) * 4, 1)
    L = max(128, (L // 128) * 128)
    if L >= XY:
        L = XY

    tc = (6 << 20) // max(L * 4, 1)
    tc = max(8, (tc // 8) * 8)
    if tc >= Cp:
        if Cp >= 16 and L == XY:
            tc = ((Cp // 2 + 7) // 8) * 8     # split channels -> >=2 grid steps
        else:
            tc = Cp                           # tiny case, or spatial axis already >=2
    return tc, L


def positional_encoding_permute_2d(x, *, use_pallas=None):
    """JAX/Pallas equivalent of PositionalEncodingPermute2D(channels=C)(x)."""
    B, C, X, Y = x.shape
    tx, ty, rx, ry = _build_tables(C, X, Y)
    out_dtype = np.dtype(x.dtype)
    enc_bytes = C * X * Y * out_dtype.itemsize

    if use_pallas is None:
        # Size-based dispatch: for tiny encodings the fixed pallas_call launch
        # overhead exceeds the HBM writeback; the encoding is input-independent,
        # so just return the host-precomputed constant.
        use_pallas = enc_bytes >= (4 << 20)

    if not use_pallas:
        enc_np = (tx[:C, :, None] + ty[:C, None, :]).astype(out_dtype)  # exact
        enc = jnp.asarray(enc_np)
        return jnp.broadcast_to(enc[None, :, :, :], (B, C, X, Y))

    Cp = tx.shape[0]
    XY = X * Y
    tc, L = _pick_tiles(Cp, X, Y, XY)
    grid = (pl.cdiv(Cp, tc), pl.cdiv(XY, L))

    # Double-buffered VMEM footprint (output block + table blocks + R blocks).
    needed = 2 * (tc * L * out_dtype.itemsize
                  + tc * (X + Y) * 4
                  + (X + Y) * L * 4)
    vmem_limit = int(min(32 << 20, max(needed + (4 << 20), 16 << 20)))

    cost = pl.CostEstimate(
        flops=2 * Cp * XY * (X + Y),
        transcendentals=0,
        bytes_accessed=Cp * XY * out_dtype.itemsize + (Cp + XY) * (X + Y) * 4,
    )

    enc_flat = pl.pallas_call(
        _posenc_flat_kernel,
        out_shape=jax.ShapeDtypeStruct((Cp, XY), x.dtype),
        grid_spec=pl.GridSpec(
            grid=grid,
            in_specs=[
                pl.BlockSpec((tc, X), lambda i, j: (i, 0)),   # TX: changes with i only
                pl.BlockSpec((tc, Y), lambda i, j: (i, 0)),   # TY: changes with i only
                pl.BlockSpec((X, L), lambda i, j: (0, j)),    # RX: changes with j only
                pl.BlockSpec((Y, L), lambda i, j: (0, j)),    # RY: changes with j only
            ],
            out_specs=pl.BlockSpec((tc, L), lambda i, j: (i, j)),
        ),
        compiler_params=pltpu.CompilerParams(
            dimension_semantics=("parallel", "parallel"),
            vmem_limit_bytes=vmem_limit,
        ),
        cost_estimate=cost,
    )(jnp.asarray(tx), jnp.asarray(ty), jnp.asarray(rx), jnp.asarray(ry))

    # Drop channel padding, restore (C, X, Y), lazy-broadcast over batch.
    enc = enc_flat[:C].reshape(C, X, Y)
    return jnp.broadcast_to(enc[None, :, :, :], (B, C, X, Y))


def _reference_numpy(x):
    """Pure-numpy transcription of the PyTorch forward, for verification."""
    B, C, X, Y = x.shape
    half = int(math.ceil(C / 2))
    inv_freq = 1.0 / (10000.0 ** (np.arange(0, half, 2, dtype=np.float32)
                                  / np.float32(half)))
    pos_x = np.arange(X, dtype=np.float32)
    pos_y = np.arange(Y, dtype=np.float32)
    sx = np.einsum("i,j->ij", pos_x, inv_freq)
    sy = np.einsum("i,j->ij", pos_y, inv_freq)
    emb_x = np.concatenate([np.sin(sx), np.cos(sx)], axis=-1)[:, None, :]  # (X,1,half)
    emb_y = np.concatenate([np.sin(sy), np.cos(sy)], axis=-1)              # (Y,half)
    emb = np.zeros((X, Y, 2 * half), dtype=np.float32)
    emb[:, :, :half] = emb_x
    emb[:, :, half:2 * half] = emb_y
    out = np.broadcast_to(emb[None, :, :, :C], (B, X, Y, C)).astype(x.dtype)
    return np.transpose(out, (0, 3, 1, 2))  # -> (B, C, X, Y)


if __name__ == "__main__":
    key = jax.random.PRNGKey(0)

    # Primary case: batch=2, channels=4, spatial 16x16 (NCHW), Pallas path forced
    # (the auto-dispatcher would pick the constant path at this tiny size).
    x = jax.random.normal(key, (2, 4, 16, 16), dtype=jnp.float32)
    out = jax.block_until_ready(positional_encoding_permute_2d(x, use_pallas=True))
    np.testing.assert_allclose(np.asarray(out), _reference_numpy(np.asarray(x)),
                               rtol=1e-5, atol=1e-5)

    # Exercise the cdiv grid / partial-block path (C=20 -> padded to 24, tile 16).
    x2 = jax.random.normal(key, (1, 20, 16, 16), dtype=jnp.float32)
    out2 = jax.block_until_ready(positional_encoding_permute_2d(x2, use_pallas=True))
    np.testing.assert_allclose(np.asarray(out2), _reference_numpy(np.asarray(x2)),
                               rtol=1e-5, atol=1e-5)

    # Default (auto) dispatch path -> host-precomputed constant for tiny encodings.
    out3 = jax.block_until_ready(positional_encoding_permute_2d(x))
    np.testing.assert_allclose(np.asarray(out3), _reference_numpy(np.asarray(x)),
                               rtol=1e-5, atol=1e-5)

    print("KERNEL_OK")
</pallas_src>

<mosaic_0001>
module attributes {stable_mosaic.version = 11 : i64} {
  func.func @_posenc_flat_kernel(%arg0: i32, %arg1: i32, %arg2: memref<8x16xf32, #tpu.memory_space<vmem>>, %arg3: memref<8x16xf32, #tpu.memory_space<vmem>>, %arg4: memref<16x256xf32, #tpu.memory_space<vmem>>, %arg5: memref<16x256xf32, #tpu.memory_space<vmem>>, %arg6: memref<8x256xf32, #tpu.memory_space<vmem>>) attributes {dimension_semantics = [#tpu.dimension_semantics<parallel>, #tpu.dimension_semantics<parallel>], iteration_bounds = array<i64: 1, 1>, scalar_prefetch = 0 : i64, scratch_operands = 0 : i64, tpu.core_type = #tpu.core_type<tc>, window_params = [{transform_indices = @transform_0, window_bounds = array<i64: 8, 16>}, {transform_indices = @transform_1, window_bounds = array<i64: 8, 16>}, {transform_indices = @transform_2, window_bounds = array<i64: 16, 256>}, {transform_indices = @transform_3, window_bounds = array<i64: 16, 256>}, {transform_indices = @transform_4, window_bounds = array<i64: 8, 256>}]} {
    %c0 = arith.constant 0 : index
    %c0_0 = arith.constant 0 : index
    %0 = vector.load %arg2[%c0, %c0_0] : memref<8x16xf32, #tpu.memory_space<vmem>>, vector<8x16xf32>
    %c0_1 = arith.constant 0 : index
    %c0_2 = arith.constant 0 : index
    %1 = vector.load %arg4[%c0_1, %c0_2] : memref<16x256xf32, #tpu.memory_space<vmem>>, vector<16x256xf32>
    %cst = arith.constant dense<0.000000e+00> : vector<8x256xf32>
    %2 = tpu.matmul %0, %1, %cst {dimension_numbers = #tpu.dot_dimension_numbers<[1], [0], [0], [1], [0, 0, 1, 1], [], []>, precision = #tpu.contract_precision<fp32>} : vector<8x16xf32>, vector<16x256xf32>, vector<8x256xf32> -> vector<8x256xf32>
    %c0_3 = arith.constant 0 : index
    %c0_4 = arith.constant 0 : index
    %3 = vector.load %arg3[%c0_3, %c0_4] : memref<8x16xf32, #tpu.memory_space<vmem>>, vector<8x16xf32>
    %c0_5 = arith.constant 0 : index
    %c0_6 = arith.constant 0 : index
    %4 = vector.load %arg5[%c0_5, %c0_6] : memref<16x256xf32, #tpu.memory_space<vmem>>, vector<16x256xf32>
    %cst_7 = arith.constant dense<0.000000e+00> : vector<8x256xf32>
    %5 = tpu.matmul %3, %4, %cst_7 {dimension_numbers = #tpu.dot_dimension_numbers<[1], [0], [0], [1], [0, 0, 1, 1], [], []>, precision = #tpu.contract_precision<fp32>} : vector<8x16xf32>, vector<16x256xf32>, vector<8x256xf32> -> vector<8x256xf32>
    %6 = arith.addf %2, %5 : vector<8x256xf32>
    %c0_8 = arith.constant 0 : index
    %c0_9 = arith.constant 0 : index
    %7 = vector.load %arg6[%c0_8, %c0_9] : memref<8x256xf32, #tpu.memory_space<vmem>>, vector<8x256xf32>
    tpu.vector_store %arg6[%c0_8, %c0_9], %6 {strides = array<i32>} : memref<8x256xf32, #tpu.memory_space<vmem>>, vector<8x256xf32>,
    return
  }
  func.func @transform_0(%arg0: i32, %arg1: i32) -> (i32, i32) {
    %c0_i32 = arith.constant 0 : i32
    %c0_i32_0 = arith.constant 0 : i32
    return %arg0, %c0_i32 : i32, i32
  }
  func.func @transform_1(%arg0: i32, %arg1: i32) -> (i32, i32) {
    %c0_i32 = arith.constant 0 : i32
    %c0_i32_0 = arith.constant 0 : i32
    return %arg0, %c0_i32 : i32, i32
  }
  func.func @transform_2(%arg0: i32, %arg1: i32) -> (i32, i32) {
    %c0_i32 = arith.constant 0 : i32
    %c0_i32_0 = arith.constant 0 : i32
    return %c0_i32, %arg1 : i32, i32
  }
  func.func @transform_3(%arg0: i32, %arg1: i32) -> (i32, i32) {
    %c0_i32 = arith.constant 0 : i32
    %c0_i32_0 = arith.constant 0 : i32
    return %c0_i32, %arg1 : i32, i32
  }
  func.func @transform_4(%arg0: i32, %arg1: i32) -> (i32, i32) {
    %c0_i32 = arith.constant 0 : i32
    return %arg0, %arg1 : i32, i32
  }
}

</mosaic_0001>

<bundles_post_ra>
// kernel: tpu_custom_call.1
= control target key start
LH: loop header
LB: loop body
LE: loop exit
PB: predicated region body
PF: predicated region fallthrough
CT: control target
= control target key end

     0   :  { %9 = vsyncpa [#allocation3], 0  ;;  %s1476_s0 = inlined_call_operand.hbm [shape: f32[8,16], index: 0, kind: input, shape index: {}]   ;;  %s1477_s1 = inlined_call_operand.hbm [shape: f32[8,16], index: 1, kind: input, shape index: {}]   ;;  %s1478_s2 = inlined_call_operand.hbm [shape: f32[16,256], index: 2, kind: input, shape index: {}]   ;;  %s1479_s3 = inlined_call_operand.hbm [shape: f32[16,256], index: 3, kind: input, shape index: {}]   ;;  %s1480_s4 = inlined_call_operand.hbm [shape: f32[8,256], index: 4, kind: output, shape index: {}]  }
   0x1   :  { %10 = vsyncpa [#allocation6], 0 }
   0x2   :  { %11 = vsyncpa [#allocation9], 0 }
   0x3   :  { %12 = vsyncpa [#allocation4], 0  ;;  %s1283_s15 = smov [#allocation5]   ;;  %s1284_s17 = smov [#allocation2]  }
   0x4   :  { %s29_s16 = sshll.u32 %s1283_s15, 4  ;;  %s19_s18 = sshll.u32 %s1284_s17, 4  ;;  %s30_s16 = int_to_ptr.vmem [resolvable:$true] %s29_s16  ;;  %s20_s18 = int_to_ptr.vmem [resolvable:$true] %s19_s18 }
   0x5   :  { %s1165_s21 = scalar_lea.hbm %s1477_s1, 128 }
   0x6   :  { %p1166_p0 = scmp.ne.s32.totalorder %s1477_s1, %s1165_s21  ;;  %p1169_p1 = scmp.lt.u32.totalorder %s1165_s21, %s1477_s1 }
   0x8   :  { %p1171_p2 = pnand %p1169_p1, %p1166_p0 }
   0xa   :  { %1174 = shalt.err (!%p1171_p2)
}
   0xb   :  { %s1175_s26 = scalar_lea.vmem %s30_s16, 128  ;;  %p1180_p4 = scmp.lt.s32.totalorder %s30_s16, %s30_s16 }
   0xc   :  { %p1176_p3 = scmp.ne.s32.totalorder %s30_s16, %s1175_s26  ;;  %p1181_p5 = scmp.lt.s32.totalorder %s1175_s26, %s1175_s26 }
   0xe   :  { %p1182_p6 = por %p1181_p5, %p1180_p4 }
  0x10   :  { %p1183_p7 = pnand %p1182_p6, %p1176_p3 }
  0x12   :  { %1186 = shalt.err (!%p1183_p7)
}
  0x13   :  { %32 = dma.hbm_to_vmem [thread:$0]  %s1477_s1, 128, %s30_s16, [#allocation6]  }
  0x14   :  { %s1187_s5 = scalar_lea.hbm %s1476_s0, 128 }
  0x15   :  { %p1188_p8 = scmp.ne.s32.totalorder %s1476_s0, %s1187_s5  ;;  %p1191_p9 = scmp.lt.u32.totalorder %s1187_s5, %s1476_s0 }
  0x17   :  { %p1193_p10 = pnand %p1191_p9, %p1188_p8 }
  0x19   :  { %1196 = shalt.err (!%p1193_p10)
}
  0x1a   :  { %s1197_s10 = scalar_lea.vmem %s20_s18, 128  ;;  %p1202_p12 = scmp.lt.s32.totalorder %s20_s18, %s20_s18 }
  0x1b   :  { %p1198_p11 = scmp.ne.s32.totalorder %s20_s18, %s1197_s10  ;;  %p1203_p13 = scmp.lt.s32.totalorder %s1197_s10, %s1197_s10 }
  0x1d   :  { %p1204_p0 = por %p1203_p13, %p1202_p12 }
  0x1f   :  { %p1205_p1 = pnand %p1204_p0, %p1198_p11 }
  0x21   :  { %1208 = shalt.err (!%p1205_p1)
}
  0x22   :  { %22 = dma.hbm_to_vmem [thread:$0]  %s1476_s0, 128, %s20_s18, [#allocation3]  }
  0x23   :  { %s1285_s12 = smov [#allocation7]   ;;  %s1209_s16 = scalar_lea.hbm %s1478_s2, 512 }
  0x24   :  { %s38_s13 = sshll.u32 %s1285_s12, 4  ;;  %p1210_p2 = scmp.ne.s32.totalorder %s1478_s2, %s1209_s16  ;;  %s39_s13 = int_to_ptr.vmem [resolvable:$true] %s38_s13 }
  0x25   :  { %p1213_p3 = scmp.lt.u32.totalorder %s1209_s16, %s1478_s2 }
  0x27   :  { %p1215_p4 = pnand %p1213_p3, %p1210_p2 }
  0x29   :  { %1218 = shalt.err (!%p1215_p4)
}
  0x2a   :  { %s1219_s22 = scalar_lea.vmem %s39_s13, 512  ;;  %p1224_p6 = scmp.lt.s32.totalorder %s39_s13, %s39_s13 }
  0x2b   :  { %p1220_p5 = scmp.ne.s32.totalorder %s39_s13, %s1219_s22  ;;  %p1225_p7 = scmp.lt.s32.totalorder %s1219_s22, %s1219_s22 }
  0x2d   :  { %p1226_p8 = por %p1225_p7, %p1224_p6 }
  0x2f   :  { %p1227_p9 = pnand %p1226_p8, %p1220_p5 }
  0x31   :  { %1230 = shalt.err (!%p1227_p9)
}
  0x32   :  { %s1286_s0 = smov 256   ;;  %s1287_s18 = smov 16  }
  0x33   :  { %44 = dma.hbm_to_vmem [thread:$0]  %s1478_s2, 512, %s39_s13, [#allocation6], %s1286_s0, %s1286_s0, %s1287_s18  }
  0x34   :  { %s1288_s25 = smov [#allocation8]   ;;  %s1231_s29 = scalar_lea.hbm %s1479_s3, 512 }
  0x35   :  { %s50_s26 = sshll.u32 %s1288_s25, 4  ;;  %p1232_p10 = scmp.ne.s32.totalorder %s1479_s3, %s1231_s29  ;;  %s51_s26 = int_to_ptr.vmem [resolvable:$true] %s50_s26 }
  0x36   :  { %p1235_p11 = scmp.lt.u32.totalorder %s1231_s29, %s1479_s3 }
  0x38   :  { %p1237_p12 = pnand %p1235_p11, %p1232_p10 }
  0x3a   :  { %1240 = shalt.err (!%p1237_p12)
}
  0x3b   :  { %s1241_s8 = scalar_lea.vmem %s51_s26, 512  ;;  %p1246_p0 = scmp.lt.s32.totalorder %s51_s26, %s51_s26 }
  0x3c   :  { %p1242_p13 = scmp.ne.s32.totalorder %s51_s26, %s1241_s8  ;;  %p1247_p1 = scmp.lt.s32.totalorder %s1241_s8, %s1241_s8 }
  0x3e   :  { %p1248_p2 = por %p1247_p1, %p1246_p0 }
  0x40   :  { %p1249_p3 = pnand %p1248_p2, %p1242_p13 }
  0x42   :  { %1252 = shalt.err (!%p1249_p3)
}
  0x43   :  { %56 = dma.hbm_to_vmem [thread:$0]  %s1479_s3, 512, %s51_s26, [#allocation9], %s1286_s0, %s1286_s0, %s1287_s18  }
  0x44   :  { %1275 = dma.done.wait [#allocation3], 128  }
  0x45   :  { %1276 = vsyncadd [#allocation3], 4294967168 }
  0x46   :  { %1277 = dma.done.wait [#allocation6], 640  }
  0x47   :  { %1278 = vsyncadd [#allocation6], 4294966656 }
  0x48   :  { %1279 = dma.done.wait [#allocation9], 512  }
  0x49   :  { %1280 = vsyncadd [#allocation9], 4294966784  ;;  %v1289_v0 = vmov 0.0   ;;  %v76_v1 = vld [vmem:[#allocation8 + $0x8] sm:$0xff]  ;;  %v78_v2 = vld [vmem:[#allocation8 + $0x18] sm:$0xff]  ;;  %vm79_vm0 = vcmask 130048  }
  0x4a   :  { %151 = vmatprep.mubr.f32.mxu1 %v1289_v0  ;;  %645 = vmatprep.mubr.f32.mxu0 %v1289_v0  ;;  %v71_v3 = vld [vmem:[#allocation7 + $0x8] sm:$0xff]  ;;  %v83_v4 = vand.u32 4294901760, %v76_v1  ;;  %v87_v5 = vand.u32 4294901760, %v78_v2  ;;  %v73_v6 = vld [vmem:[#allocation7 + $0x18] sm:$0xff]  ;;  %v75_v8 = vld [vmem:[#allocation8] sm:$0xff]  ;;  %s1290_s3 = smov [#allocation10]  }
  0x4b   :  { %v577_v7 = vand.u32 4294901760, %v71_v3  ;;  %v77_v9 = vld [vmem:[#allocation8 + $0x10] sm:$0xff]  ;;  %v581_v10 = vand.u32 4294901760, %v73_v6  ;;  %v85_v11 = vand.u32 4294901760, %v75_v8  ;;  %v70_v13 = vld [vmem:[#allocation7] sm:$0xff]  ;;  %v74_v15 = vld [vmem:[#allocation5] sm:$0xff] }
  0x4c   :  { %v89_v12 = vand.u32 4294901760, %v77_v9  ;;  %v72_v14 = vld [vmem:[#allocation7 + $0x10] sm:$0xff]  ;;  %v1366_v16 = vpack.c.bf16 %v87_v5, %v83_v4  ;;  %v1368_v17 = vsub.f32 %v76_v1, %v83_v4  ;;  %v1370_v18 = vsub.f32 %v78_v2, %v87_v5  ;;  %s1076_s10 = sshll.u32 %s1290_s3, 4  ;;  %s1077_s10 = int_to_ptr.vmem [resolvable:$true] %s1076_s10 }
  0x4d   :  { %v1372_v19 = vsub.f32 %v71_v3, %v577_v7  ;;  %v69_v20 = vld [vmem:[#allocation2] sm:$0xff]  ;;  %v1374_v21 = vpack.c.bf16 %v581_v10, %v577_v7  ;;  %v1376_v22 = vsub.f32 %v73_v6, %v581_v10  ;;  %v1380_v24 = vsub.f32 %v75_v8, %v85_v11  ;;  %s1253_s1 = scalar_lea.vmem %s1077_s10, 256  ;;  %p1258_p5 = scmp.lt.s32.totalorder %s1077_s10, %s1077_s10 }
  0x4e   :  { %v1378_v23 = vpack.c.bf16 %v89_v12, %v85_v11  ;;  %1088 = vmatprep.subr.bf16.mxu1 %v1366_v16  ;;  %v1383_v25 = vsub.f32 %v77_v9, %v89_v12  ;;  %v579_v26 = vand.u32 4294901760, %v70_v13  ;;  %v583_v27 = vand.u32 4294901760, %v72_v14  ;;  %p1254_p4 = scmp.ne.s32.totalorder %s1077_s10, %s1253_s1  ;;  %p1259_p6 = scmp.lt.s32.totalorder %s1253_s1, %s1253_s1 }
  0x4f   :  { %v81_v28 = vsel %vm79_vm0, %v74_v15, 0  ;;  %1112 = vmatprep.subr.bf16.mxu0 %v1374_v21  ;;  %v575_v30 = vsel %vm79_vm0, %v69_v20, 0  ;;  %v165_v31 = vand.u32 4294901760, %v1368_v17  ;;  %v177_v32 = vand.u32 4294901760, %v1370_v18 }
  0x50   :  { %1090 = vmatpush1.bf16.msra.mxu1 %v1378_v23  ;;  %v1388_v29 = vand.u32 4294901760, %v81_v28  ;;  %v1393_v33 = vpack.c.bf16 %v583_v27, %v579_v26  ;;  %v1395_v34 = vsub.f32 %v70_v13, %v579_v26  ;;  %v1397_v35 = vsub.f32 %v72_v14, %v583_v27  ;;  %p1260_p7 = por %p1259_p6, %p1258_p5 }
  0x51   :  { %v1399_v36 = vand.u32 4294901760, %v575_v30  ;;  %v166_v38 = vsub.f32 %v1368_v17, %v165_v31  ;;  %v178_v39 = vsub.f32 %v1370_v18, %v177_v32  ;;  %v659_v40 = vand.u32 4294901760, %v1372_v19 }
  0x52   :  { %v1402_v37 = vsub.f32 %v81_v28, %v1388_v29  ;;  %1114 = vmatpush1.bf16.msra.mxu0 %v1393_v33  ;;  %v671_v42 = vand.u32 4294901760, %v1376_v22  ;;  %v171_v43 = vand.u32 4294901760, %v1380_v24  ;;  %v183_v44 = vand.u32 4294901760, %v1383_v25  ;;  %p1261_p8 = pnand %p1260_p7, %p1254_p4 }
  0x53   :  { %v1411_v41 = vsub.f32 %v575_v30, %v1399_v36  ;;  %v167_v46 = vand.u32 4294901760, %v166_v38  ;;  %v179_v47 = vand.u32 4294901760, %v178_v39  ;;  %v660_v48 = vsub.f32 %v1372_v19, %v659_v40 }
  0x54   :  { %v154_v45 = vand.u32 4294901760, %v1402_v37  ;;  %v672_v50 = vsub.f32 %v1376_v22, %v671_v42  ;;  %v172_v51 = vsub.f32 %v1380_v24, %v171_v43  ;;  %v184_v52 = vsub.f32 %v1383_v25, %v183_v44 }
  0x55   :  { %v648_v49 = vand.u32 4294901760, %v1411_v41  ;;  %v1091_v54 = vpack.c.bf16 %v179_v47, %v167_v46  ;;  %v661_v55 = vand.u32 4294901760, %v660_v48  ;;  %v665_v56 = vand.u32 4294901760, %v1395_v34 }
  0x56   :  { %v155_v53 = vsub.f32 %v1402_v37, %v154_v45  ;;  %v673_v58 = vand.u32 4294901760, %v672_v50  ;;  %v173_v59 = vand.u32 4294901760, %v172_v51  ;;  %v185_v60 = vand.u32 4294901760, %v184_v52 }
  0x57   :  { %v649_v57 = vsub.f32 %v1411_v41, %v648_v49  ;;  %1092 = vmatprep.subr.bf16.mxu1 %v1091_v54  ;;  %v666_v62 = vsub.f32 %v1395_v34, %v665_v56  ;;  %v677_v63 = vand.u32 4294901760, %v1397_v35  ;;  %v1095_v4 = vpack.c.bf16 %v1370_v18, %v1368_v17 }
  0x58   :  { %v156_v61 = vand.u32 4294901760, %v155_v53  ;;  %v1115_v2 = vpack.c.bf16 %v673_v58, %v661_v55  ;;  %v1093_v3 = vpack.c.bf16 %v185_v60, %v173_v59  ;;  %v1119_v8 = vpack.c.bf16 %v1376_v22, %v1372_v19 }
  0x59   :  { %v650_v1 = vand.u32 4294901760, %v649_v57  ;;  %v667_v5 = vand.u32 4294901760, %v666_v62  ;;  %v678_v6 = vsub.f32 %v1397_v35, %v677_v63  ;;  %v1097_v10 = vpack.c.bf16 %v1383_v25, %v1380_v24 }
  0x5a   :  { %157 = vmatmul.mubr.f32.vlgmr.msra.gmra.mrb[0].mxu1 %v156_v61  ;;  %1116 = vmatprep.subr.bf16.mxu0 %v1115_v2  ;;  %v1121_v11 = vpack.c.bf16 %v1397_v35, %v1395_v34  ;;  %v1103_v12 = vpack.c.bf16 %v177_v32, %v165_v31  ;;  %v1127_v13 = vpack.c.bf16 %v671_v42, %v659_v40 }
  0x5b   :  { %651 = vmatmul.mubr.f32.vlgmr.msra.gmra.mrb[0].mxu0 %v650_v1  ;;  %1094 = vmatpush1.bf16.msra.mxu1 %v1093_v3  ;;  %v679_v7 = vand.u32 4294901760, %v678_v6  ;;  %v1105_v14 = vpack.c.bf16 %v183_v44, %v171_v43  ;;  %v1129_v15 = vpack.c.bf16 %v677_v63, %v665_v56 }
  0x5c   :  { %247 = vmatprep.mubr.f32.mxu1 %v1289_v0  ;;  %741 = vmatprep.mubr.f32.mxu0 %v1289_v0 }
  0x5d   :  { %1096 = vmatprep.subr.bf16.mxu1 %v1095_v4  ;;  %v1117_v9 = vpack.c.bf16 %v679_v7, %v667_v5 }
  0x5f   :  { %1118 = vmatpush1.bf16.msra.mxu0 %v1117_v9 }
  0x60   :  { %1120 = vmatprep.subr.bf16.mxu0 %v1119_v8 }
  0x62   :  { %249 = vmatmul.mubr.f32.vlgmr.msra.gmra.mrb[0].mxu1 %v1388_v29 }
  0x63   :  { %743 = vmatmul.mubr.f32.vlgmr.msra.gmra.mrb[0].mxu0 %v1399_v36  ;;  %1098 = vmatpush1.bf16.msra.mxu1 %v1097_v10 }
  0x64   :  { %1122 = vmatpush1.bf16.msra.mxu0 %v1121_v11  ;;  %327 = vmatprep.mubr.f32.mxu1 %v1289_v0 }
  0x65   :  { %821 = vmatprep.mubr.f32.mxu0 %v1289_v0  ;;  %1100 = vmatprep.subr.bf16.mxu1 %v1366_v16 }
  0x66   :  { %1124 = vmatprep.subr.bf16.mxu0 %v1374_v21 }
  0x6a   :  { %330 = vmatmul.mubr.f32.vlgmr.msra.gmra.mrb[0].mxu1 %v1402_v37 }
  0x6b   :  { %824 = vmatmul.mubr.f32.vlgmr.msra.gmra.mrb[0].mxu0 %v1411_v41  ;;  %1102 = vmatpush1.bf16.msra.mxu1 %v1378_v23 }
  0x6c   :  { %1126 = vmatpush1.bf16.msra.mxu0 %v1393_v33  ;;  %404 = vmatprep.mubr.f32.mxu1 %v1289_v0 }
  0x6d   :  { %898 = vmatprep.mubr.f32.mxu0 %v1289_v0  ;;  %1104 = vmatprep.subr.bf16.mxu1 %v1103_v12 }
  0x6e   :  { %1128 = vmatprep.subr.bf16.mxu0 %v1127_v13 }
  0x72   :  { %408 = vmatmul.mubr.f32.vlgmr.msra.gmra.mrb[0].mxu1 %v154_v45 }
  0x73   :  { %902 = vmatmul.mubr.f32.vlgmr.msra.gmra.mrb[0].mxu0 %v648_v49  ;;  %1106 = vmatpush1.bf16.msra.mxu1 %v1105_v14 }
  0x74   :  { %1130 = vmatpush1.bf16.msra.mxu0 %v1129_v15  ;;  %490 = vmatprep.mubr.f32.mxu1 %v1289_v0 }
  0x75   :  { %984 = vmatprep.mubr.f32.mxu0 %v1289_v0  ;;  %1108 = vmatprep.subr.bf16.mxu1 %v1366_v16 }
  0x76   :  { %1132 = vmatprep.subr.bf16.mxu0 %v1374_v21 }
  0x7a   :  { %492 = vmatmul.mubr.f32.vlgmr.msra.gmra.mrb[0].mxu1 %v1388_v29 }
  0x7b   :  { %986 = vmatmul.mubr.f32.vlgmr.msra.gmra.mrb[0].mxu0 %v1399_v36  ;;  %1110 = vmatpush1.bf16.msra.mxu1 %v1378_v23 }
  0x7c   :  { %1134 = vmatpush1.bf16.msra.mxu0 %v1393_v33  ;;  %566 = vmatprep.mubr.f32.mxu1 %v1289_v0 }
  0x7d   :  { %1060 = vmatprep.mubr.f32.mxu0 %v1289_v0 }
  0x82   :  { %568 = vmatmul.mubr.f32.vlgmr.msra.gmra.mrb[0].mxu1 %v1388_v29 }
  0x83   :  { %1062 = vmatmul.mubr.f32.vlgmr.msra.gmra.mrb[0].mxu0 %v1399_v36 }
 0x155   :  { %v569_v17 = vpop.f32.mrb[0].mxu1 }
 0x156   :  { %v1063_v16 = vpop.f32.mrb[0].mxu0  ;;  %v571_v18 = vpop.f32.mrb[1].mxu1 }
 0x157   :  { %v1135_v19 = vadd.f32 %v1063_v16, %v569_v17  ;;  %v1065_v20 = vpop.f32.mrb[1].mxu0 }
 0x158   :  { %v1136_v21 = vadd.f32 %v1065_v20, %v571_v18 }
 0x159   :  { %1068 = vst [vmem:[#allocation10] sm:$0xff] %v1135_v19 }
 0x15a   :  { %1069 = vst [vmem:[#allocation10 + $0x8] sm:$0xff] %v1136_v21 }
 0x15b   :  { %1264 = shalt.err (!%p1261_p8)
}
 0x15c   :  { %s1265_s13 = scalar_lea.hbm %s1480_s4, 256 }
 0x15d   :  { %p1266_p9 = scmp.ne.s32.totalorder %s1480_s4, %s1265_s13  ;;  %p1269_p10 = scmp.lt.u32.totalorder %s1265_s13, %s1480_s4 }
 0x15f   :  { %p1271_p11 = pnand %p1269_p10, %p1266_p9 }
 0x161   :  { %1274 = shalt.err (!%p1271_p11)
}
 0x162   :  { %1079 = dma.vmem_to_hbm [thread:$0]  %s1077_s10, 256, %s1480_s4, [#allocation4]  }
 0x163   :  { %1281 = dma.done.wait [#allocation4], 256  }
 0x164   :  { %1282 = vsyncadd [#allocation4], 4294967040 }
 0x165   :  { %1083 = vsyncpa [#allocation3], 1 }
 0x166   :  { %1084 = vsyncpa [#allocation6], 1 }
 0x167   :  { %1085 = vsyncpa [#allocation9], 1 }
 0x168   :  { %1086 = vsyncpa [#allocation4], 1 }

</bundles_post_ra>
